<compile_context>
chip_gen: v5e
topology: v5e:2x2
jax: 0.10.0
libtpu: 0.0.40
codegen_flags: <defaults>
</compile_context>

<pallas_src>
import functools
import math

import jax
import jax.numpy as jnp
from jax.experimental import pallas as pl
from jax.experimental.pallas import tpu as pltpu

LANE = 128      # lane width (last-dim tiling)
SUBLANE = 8     # f32 sublane tiling (second-to-last dim)


# ----------------------------------------------------------------------------
# Kernel: fully fused MLP (all layers in one kernel body)
# ----------------------------------------------------------------------------

def _predictor_kernel(x_ref, *refs, num_layers):
    """Fused MLP over one row-tile: (Linear -> ReLU) x (L-1) -> Linear.

    x_ref : (tile_m, in_dim)                activation tile
    refs  : w1, b1, w2, b2, ..., wL, bL, out_ref
            w_i : (d_in_i, d_out_i) bf16    input-major, zero-padded, resident
            b_i : (1, d_out_i)      f32
    Matmuls run on the MXU with bf16 operands / f32 accumulation; the bias
    add and ReLU stay in f32 on the VPU (v5e has no bf16 VPU/EUP).
    """
    o_ref = refs[-1]
    wb = refs[:-1]

    h = x_ref[...].astype(jnp.float32)                    # (tile_m, in_dim)
    for i in range(num_layers):
        w = wb[2 * i][...]                                # bf16 (d_in, d_out)
        b = wb[2 * i + 1][...]                            # f32  (1, d_out)
        h = jnp.dot(h.astype(w.dtype), w,
                    preferred_element_type=jnp.float32) + b
        if i < num_layers - 1:                            # ReLU on all but last
            h = jnp.maximum(h, 0.0)
    o_ref[...] = h.astype(o_ref.dtype)


# ----------------------------------------------------------------------------
# Wrapper helpers
# ----------------------------------------------------------------------------

def _round_up(a, b):
    return (a + b - 1) // b * b


def _vmem_capacity_bytes():
    """Real VMEM capacity if queryable, else a v7x-safe 64 MiB fallback."""
    try:
        return int(pltpu.get_tpu_info().vmem_capacity_bytes)
    except Exception:
        return 64 * 1024 * 1024


def _prepare_params(params):
    """Zero-pad every layer's output width (and the following layer's input
    width) up to a multiple of 128 lanes, and cast weights to bf16 (MXU
    operands). Padded columns get zero weight + zero bias, so after ReLU they
    stay zero and feed zero rows into the next layer: the padded network is
    numerically identical on the real columns."""
    padded = []
    prev_p = params[0][0].shape[0]            # first in_dim stays unpadded
    for (w, b) in params:
        d_in, d_out = w.shape
        d_out_p = _round_up(d_out, LANE)
        w_p = jnp.pad(w, ((0, prev_p - d_in), (0, d_out_p - d_out)))
        b_p = jnp.pad(b.reshape(1, -1), ((0, 0), (0, d_out_p - d_out)))
        padded.append((w_p.astype(jnp.bfloat16), b_p.astype(jnp.float32)))
        prev_p = d_out_p
    return padded


def _choose_tile_m(M, in_dim, out_dims_p, x_bytes, out_bytes, vmem_cap):
    """Pick the largest row tile that fits the VMEM budget (x/out tiles are
    double-buffered, weights single-buffered, plus f32 intermediates), capped
    at 512 rows (1024 when >=96 MiB VMEM), and ensure >=2 grid steps so both
    v7x TensorCores get work. Returns (tile_m, estimated_vmem_bytes)."""
    max_w = max([in_dim] + out_dims_p)
    w_bytes = 0
    prev = in_dim
    for d in out_dims_p:
        w_bytes += prev * d * 2 + d * 4       # bf16 weight + f32 bias
        prev = d

    def est(t):
        act = t * in_dim * x_bytes * 2 + t * out_dims_p[-1] * out_bytes * 2
        interm = t * max_w * 4 * 3            # a few live f32 copies of h
        return act + w_bytes + interm

    if M <= SUBLANE:
        return M, est(M)                      # single full-extent row block

    cap_rows = 1024 if vmem_cap >= (96 << 20) else 512
    tile = min(cap_rows, (M // SUBLANE) * SUBLANE)
    while tile > SUBLANE and est(tile) > 0.7 * vmem_cap:
        tile = max(SUBLANE, _round_up(tile // 2, SUBLANE))

    # v7x megacore: with a single grid step the second TensorCore idles.
    if pl.cdiv(M, tile) < 2:
        tile = max(SUBLANE, _round_up(pl.cdiv(M, 2), SUBLANE))
    return tile, est(tile)


# ----------------------------------------------------------------------------
# Wrapper
# ----------------------------------------------------------------------------

def predictor_forward(x, params):
    """x: (..., in_dim) -> (..., out_dim). params: list of (w (in,out), b (1,out))."""
    num_layers = len(params)
    in_dim = x.shape[-1]
    out_dim = params[-1][0].shape[1]
    lead_shape = x.shape[:-1]
    M = int(math.prod(lead_shape)) if lead_shape else 1

    if M == 0:  # empty batch: nothing to launch
        return jnp.zeros((*lead_shape, out_dim), x.dtype)

    # Flatten leading dims into one row axis. No row padding and no row slice
    # on the output: ragged last block is handled by Pallas.
    x2 = x.reshape(M, in_dim)
    x_bytes = jnp.dtype(x.dtype).itemsize
    out_bytes = x_bytes
    # Note: streaming x/out as bf16 would halve activation HBM traffic; kept
    # at the caller's dtype to preserve the module's I/O contract.

    pparams = _prepare_params(params)
    out_dims_p = [w.shape[1] for (w, _) in pparams]
    out_dim_p = out_dims_p[-1]

    vmem_cap = _vmem_capacity_bytes()
    tile_m, est_bytes = _choose_tile_m(M, in_dim, out_dims_p,
                                       x_bytes, out_bytes, vmem_cap)
    grid = (pl.cdiv(M, tile_m),)
    vmem_limit = int(min(0.9 * vmem_cap, max(2 * est_bytes, 32 << 20)))

    in_specs = [pl.BlockSpec((tile_m, in_dim), lambda i: (i, 0))]
    flat_params = []
    for (w, b) in pparams:
        d_in, d_out = w.shape
        # Constant operands: index map is (0,0) for every grid step, so a
        # single buffer suffices; the saved VMEM goes into a larger row tile.
        in_specs.append(pl.BlockSpec((d_in, d_out), lambda i: (0, 0),
                                     pipeline_mode=pl.Buffered(1)))
        in_specs.append(pl.BlockSpec((1, d_out), lambda i: (0, 0),
                                     pipeline_mode=pl.Buffered(1)))
        flat_params += [w, b]

    flops = 2 * M * sum(w.shape[0] * w.shape[1] for (w, _) in pparams)
    param_bytes = sum(w.size * w.dtype.itemsize + b.size * b.dtype.itemsize
                      for (w, b) in pparams)
    bytes_accessed = (M * in_dim * x_bytes + M * out_dim_p * out_bytes
                      + param_bytes)

    kernel = functools.partial(_predictor_kernel, num_layers=num_layers)

    out = pl.pallas_call(
        kernel,
        out_shape=jax.ShapeDtypeStruct((M, out_dim_p), x.dtype),
        grid=grid,
        in_specs=in_specs,
        out_specs=pl.BlockSpec((tile_m, out_dim_p), lambda i: (i, 0)),
        compiler_params=pltpu.CompilerParams(
            dimension_semantics=("parallel",),   # megacore split on v7x
            vmem_limit_bytes=vmem_limit),
        cost_estimate=pl.CostEstimate(flops=flops, transcendentals=0,
                                      bytes_accessed=bytes_accessed),
    )(x2, *flat_params)

    # Only the lane padding of the final width is sliced off (column slice).
    return out[:, :out_dim].reshape(*lead_shape, out_dim)


# ----------------------------------------------------------------------------
# Parameter construction (deterministic, synthetic)
# ----------------------------------------------------------------------------

def init_predictor_params(key, in_dim, out_dim, mlp_dim=None, depth=3):
    mlp_dims = [mlp_dim or in_dim] * (depth - 1)
    in_dims = [in_dim] + mlp_dims
    out_dims = mlp_dims + [out_dim]
    params = []
    keys = jax.random.split(key, depth)
    for k, (di, do) in zip(keys, zip(in_dims, out_dims)):
        kw, kb = jax.random.split(k)
        w = jax.random.normal(kw, (di, do), jnp.float32) * 0.05   # (in, out)
        b = jax.random.normal(kb, (1, do), jnp.float32) * 0.02
        params.append((w, b))
    return params


# ----------------------------------------------------------------------------
# Pure-JAX reference (correctness check)
# ----------------------------------------------------------------------------

def ref_predictor_forward(x, params):
    h = x
    for (w, b) in params[:-1]:
        h = jnp.maximum(h @ w + b, 0.0)
    w, b = params[-1]
    return h @ w + b


# ----------------------------------------------------------------------------
# Main
# ----------------------------------------------------------------------------

if __name__ == "__main__":
    B = 2           # batch
    L = 8           # tokens per batch element
    IN_DIM = 32
    MLP_DIM = 64
    OUT_DIM = 16
    DEPTH = 3

    root = jax.random.PRNGKey(0)
    kp, kx = jax.random.split(root)

    params = init_predictor_params(kp, IN_DIM, OUT_DIM, MLP_DIM, DEPTH)
    x = jax.random.normal(kx, (B, L, IN_DIM), jnp.float32)

    out = predictor_forward(x, params)
    out = jax.block_until_ready(out)

    ref = ref_predictor_forward(x, params)
    assert out.shape == (B, L, OUT_DIM)
    assert bool(jnp.all(jnp.isfinite(out)))
    # bf16 MXU operands -> looser tolerance against the pure-f32 reference.
    assert jnp.allclose(out, ref, rtol=2e-2, atol=2e-2), "mismatch vs reference"

    # TODO(synk): torch.autograd.set_detect_anomaly is an autograd debug hook
    # with no forward-pass effect; intentionally not modeled.

    print("KERNEL_OK")
</pallas_src>

<mosaic_0001>
module attributes {stable_mosaic.version = 11 : i64} {
  func.func @_predictor_kernel(%arg0: i32, %arg1: memref<8x32xf32, #tpu.memory_space<vmem>>, %arg2: memref<32x128xbf16, #tpu.memory_space<vmem>>, %arg3: memref<1x128xf32, #tpu.memory_space<vmem>>, %arg4: memref<128x128xbf16, #tpu.memory_space<vmem>>, %arg5: memref<1x128xf32, #tpu.memory_space<vmem>>, %arg6: memref<128x128xbf16, #tpu.memory_space<vmem>>, %arg7: memref<1x128xf32, #tpu.memory_space<vmem>>, %arg8: memref<8x128xf32, #tpu.memory_space<vmem>>) attributes {dimension_semantics = [#tpu.dimension_semantics<parallel>], iteration_bounds = array<i64: 2>, scalar_prefetch = 0 : i64, scratch_operands = 0 : i64, tpu.core_type = #tpu.core_type<tc>, window_params = [{transform_indices = @transform_0, window_bounds = array<i64: 8, 32>}, {pipeline_mode = #tpu.pipeline_mode<synchronous>, transform_indices = @transform_1, window_bounds = array<i64: 32, 128>}, {pipeline_mode = #tpu.pipeline_mode<synchronous>, transform_indices = @transform_2, window_bounds = array<i64: 1, 128>}, {pipeline_mode = #tpu.pipeline_mode<synchronous>, transform_indices = @transform_3, window_bounds = array<i64: 128, 128>}, {pipeline_mode = #tpu.pipeline_mode<synchronous>, transform_indices = @transform_4, window_bounds = array<i64: 1, 128>}, {pipeline_mode = #tpu.pipeline_mode<synchronous>, transform_indices = @transform_5, window_bounds = array<i64: 128, 128>}, {pipeline_mode = #tpu.pipeline_mode<synchronous>, transform_indices = @transform_6, window_bounds = array<i64: 1, 128>}, {transform_indices = @transform_7, window_bounds = array<i64: 8, 128>}]} {
    %c0 = arith.constant 0 : index
    %c0_0 = arith.constant 0 : index
    %0 = vector.load %arg1[%c0, %c0_0] : memref<8x32xf32, #tpu.memory_space<vmem>>, vector<8x32xf32>
    %c0_1 = arith.constant 0 : index
    %c0_2 = arith.constant 0 : index
    %1 = vector.load %arg2[%c0_1, %c0_2] : memref<32x128xbf16, #tpu.memory_space<vmem>>, vector<32x128xbf16>
    %c0_3 = arith.constant 0 : index
    %c0_4 = arith.constant 0 : index
    %2 = vector.load %arg3[%c0_3, %c0_4] : memref<1x128xf32, #tpu.memory_space<vmem>>, vector<1x128xf32>
    %3 = arith.truncf %0 : vector<8x32xf32> to vector<8x32xbf16>
    %cst = arith.constant dense<0.000000e+00> : vector<8x128xf32>
    %4 = tpu.matmul %3, %1, %cst {dimension_numbers = #tpu.dot_dimension_numbers<[1], [0], [0], [1], [0, 0, 1, 1], [], []>} : vector<8x32xbf16>, vector<32x128xbf16>, vector<8x128xf32> -> vector<8x128xf32>
    %5 = vector.broadcast %2 : vector<1x128xf32> to vector<8x128xf32>
    %6 = arith.addf %4, %5 : vector<8x128xf32>
    %cst_5 = arith.constant 0.000000e+00 : f32
    %7 = vector.broadcast %cst_5 : f32 to vector<8x128xf32>
    %8 = arith.maximumf %6, %7 : vector<8x128xf32>
    %c0_6 = arith.constant 0 : index
    %c0_7 = arith.constant 0 : index
    %9 = vector.load %arg4[%c0_6, %c0_7] : memref<128x128xbf16, #tpu.memory_space<vmem>>, vector<128x128xbf16>
    %c0_8 = arith.constant 0 : index
    %c0_9 = arith.constant 0 : index
    %10 = vector.load %arg5[%c0_8, %c0_9] : memref<1x128xf32, #tpu.memory_space<vmem>>, vector<1x128xf32>
    %11 = arith.truncf %8 : vector<8x128xf32> to vector<8x128xbf16>
    %cst_10 = arith.constant dense<0.000000e+00> : vector<8x128xf32>
    %12 = tpu.matmul %11, %9, %cst_10 {dimension_numbers = #tpu.dot_dimension_numbers<[1], [0], [0], [1], [0, 0, 1, 1], [], []>} : vector<8x128xbf16>, vector<128x128xbf16>, vector<8x128xf32> -> vector<8x128xf32>
    %13 = vector.broadcast %10 : vector<1x128xf32> to vector<8x128xf32>
    %14 = arith.addf %12, %13 : vector<8x128xf32>
    %cst_11 = arith.constant 0.000000e+00 : f32
    %15 = vector.broadcast %cst_11 : f32 to vector<8x128xf32>
    %16 = arith.maximumf %14, %15 : vector<8x128xf32>
    %c0_12 = arith.constant 0 : index
    %c0_13 = arith.constant 0 : index
    %17 = vector.load %arg6[%c0_12, %c0_13] : memref<128x128xbf16, #tpu.memory_space<vmem>>, vector<128x128xbf16>
    %c0_14 = arith.constant 0 : index
    %c0_15 = arith.constant 0 : index
    %18 = vector.load %arg7[%c0_14, %c0_15] : memref<1x128xf32, #tpu.memory_space<vmem>>, vector<1x128xf32>
    %19 = arith.truncf %16 : vector<8x128xf32> to vector<8x128xbf16>
    %cst_16 = arith.constant dense<0.000000e+00> : vector<8x128xf32>
    %20 = tpu.matmul %19, %17, %cst_16 {dimension_numbers = #tpu.dot_dimension_numbers<[1], [0], [0], [1], [0, 0, 1, 1], [], []>} : vector<8x128xbf16>, vector<128x128xbf16>, vector<8x128xf32> -> vector<8x128xf32>
    %21 = vector.broadcast %18 : vector<1x128xf32> to vector<8x128xf32>
    %22 = arith.addf %20, %21 : vector<8x128xf32>
    %c0_17 = arith.constant 0 : index
    %c0_18 = arith.constant 0 : index
    %23 = vector.load %arg8[%c0_17, %c0_18] : memref<8x128xf32, #tpu.memory_space<vmem>>, vector<8x128xf32>
    tpu.vector_store %arg8[%c0_17, %c0_18], %22 {strides = array<i32>} : memref<8x128xf32, #tpu.memory_space<vmem>>, vector<8x128xf32>,
    return
  }
  func.func @transform_0(%arg0: i32) -> (i32, i32) {
    %c0_i32 = arith.constant 0 : i32
    %c0_i32_0 = arith.constant 0 : i32
    return %arg0, %c0_i32 : i32, i32
  }
  func.func @transform_1(%arg0: i32) -> (i32, i32) {
    %c0_i32 = arith.constant 0 : i32
    %c0_i32_0 = arith.constant 0 : i32
    %c0_i32_1 = arith.constant 0 : i32
    return %c0_i32, %c0_i32_0 : i32, i32
  }
  func.func @transform_2(%arg0: i32) -> (i32, i32) {
    %c0_i32 = arith.constant 0 : i32
    %c0_i32_0 = arith.constant 0 : i32
    %c0_i32_1 = arith.constant 0 : i32
    return %c0_i32, %c0_i32_0 : i32, i32
  }
  func.func @transform_3(%arg0: i32) -> (i32, i32) {
    %c0_i32 = arith.constant 0 : i32
    %c0_i32_0 = arith.constant 0 : i32
    %c0_i32_1 = arith.constant 0 : i32
    return %c0_i32, %c0_i32_0 : i32, i32
  }
  func.func @transform_4(%arg0: i32) -> (i32, i32) {
    %c0_i32 = arith.constant 0 : i32
    %c0_i32_0 = arith.constant 0 : i32
    %c0_i32_1 = arith.constant 0 : i32
    return %c0_i32, %c0_i32_0 : i32, i32
  }
  func.func @transform_5(%arg0: i32) -> (i32, i32) {
    %c0_i32 = arith.constant 0 : i32
    %c0_i32_0 = arith.constant 0 : i32
    %c0_i32_1 = arith.constant 0 : i32
    return %c0_i32, %c0_i32_0 : i32, i32
  }
  func.func @transform_6(%arg0: i32) -> (i32, i32) {
    %c0_i32 = arith.constant 0 : i32
    %c0_i32_0 = arith.constant 0 : i32
    %c0_i32_1 = arith.constant 0 : i32
    return %c0_i32, %c0_i32_0 : i32, i32
  }
  func.func @transform_7(%arg0: i32) -> (i32, i32) {
    %c0_i32 = arith.constant 0 : i32
    %c0_i32_0 = arith.constant 0 : i32
    return %arg0, %c0_i32 : i32, i32
  }
}

</mosaic_0001>

<bundles_post_ra>
// kernel: tpu_custom_call.1
= control target key start
LH: loop header
LB: loop body
LE: loop exit
PB: predicated region body
PF: predicated region fallthrough
CT: control target
= control target key end

     0   :  { %s1269_s0 = inlined_call_operand.hbm [shape: f32[16,32], index: 0, kind: input, shape index: {}]   ;;  %s1270_s1 = inlined_call_operand.hbm [shape: bf16[32,128], index: 1, kind: input, shape index: {}]   ;;  %s1271_s2 = inlined_call_operand.vmem [shape: f32[1,128], index: 2, kind: input, shape index: {}]   ;;  %s1272_s3 = inlined_call_operand.hbm [shape: bf16[128,128], index: 3, kind: input, shape index: {}]   ;;  %s1273_s4 = inlined_call_operand.vmem [shape: f32[1,128], index: 4, kind: input, shape index: {}]   ;;  %s1274_s5 = inlined_call_operand.hbm [shape: bf16[128,128], index: 5, kind: input, shape index: {}]   ;;  %s1275_s6 = inlined_call_operand.vmem [shape: f32[1,128], index: 6, kind: input, shape index: {}]   ;;  %s1276_s7 = inlined_call_operand.hbm [shape: f32[16,128], index: 7, kind: output, shape index: {}]  }
   0x1   :  { %1277 = sst [smem:[#allocation15_spill]] %s1270_s1 }
   0x2   :  { %12 = vsyncpa [#allocation3], 0 }
   0x3   :  { %14 = vsyncpa [#allocation3 + $0x1], 0 }
   0x4   :  { %15 = vsyncpa [#allocation6], 0 }
   0x5   :  { %16 = vsyncpa [#allocation9], 0 }
   0x6   :  { %17 = vsyncpa [#allocation4], 0 }
   0x7   :  { %19 = vsyncpa [#allocation4 + $0x1], 0  ;;  %s1100_s24 = smov 0   ;;  %s1102_s25 = smov 0  }
   0x8   :  { %s1104_s26 = smov 0   ;;  %s1106_s27 = smov 0  }
   0x9 LB: > { %s1278_s1 = sld [smem:[#allocation15_spill]]  ;;  %s1124_s8 = sadd.s32 4294967295, %s1053_s27   ;;  %s1053_s27 = sphi %s1106_s27, %s1289_s27   ;;  %s1049_s26 = sphi %s1104_s26, %s1288_s26   ;;  %s1045_s25 = sphi %s1102_s25, %s1287_s25   ;;  %s1041_s24 = sphi %s1100_s24, %s1286_s24  }
   0xa   : > { %p669_p0 = scmp.ge.s32.totalorder %s1053_s27, 1  ;;  %p46_p1 = scmp.eq.s32.totalorder %s1124_s8, 0 }
   0xb   : > { %p208_p2 = scmp.lt.s32.totalorder %s1053_s27, 3  ;;  %s1055_s10 = smov [#allocation5]  }
   0xc   : > { %s221_s11 = sshll.u32 %s1055_s10, 4  ;;  %s236_s14 = sshll.u32 %s1272_s3, 4  ;;  %s222_s11 = int_to_ptr.vmem [resolvable:$true] %s221_s11  ;;  %s237_s14 = int_to_ptr.hbm [resolvable:$true] %s236_s14 }
   0xd   : > { %p1129_p3 = pnand %p669_p0, %p208_p2  ;;  %s253_s18 = sshll.u32 %s1274_s5, 4  ;;  %s254_s18 = int_to_ptr.hbm [resolvable:$true] %s253_s18 }
   0xe   : > { %s1056_s19 = smov [#allocation7]   ;;  %s1057_s21 = smov 64  }
   0xf   : > { %s219_s30 = sshll.u32 %s1278_s1, 4  ;;  %p793_p4 = pneg %p1129_p3  ;;  %s220_s30 = int_to_ptr.hbm [resolvable:$true] %s219_s30 }
  0x10   : > { %s238_s20 = sshll.u32 %s1056_s19, 4  ;;  %s1058_s22 = smov 4   ;;  %s239_s20 = int_to_ptr.vmem [resolvable:$true] %s238_s20 }
  0x11   : > { %p1141_p6 = pnand %p793_p4, %p46_p1  ;;  %s1059_s23 = smov [#allocation8]  }
  0x12   : > { %s255_s28 = sshll.u32 %s1059_s23, 4  ;;  %s668_s29 = sadd.s32 4294967294, %s1053_s27   ;;  %s256_s28 = int_to_ptr.vmem [resolvable:$true] %s255_s28 }
  0x13   : > { %796 = dma.hbm_to_vmem [thread:$0]  (!%p1141_p6), %s220_s30, 256, %s222_s11, [#allocation6], %s1057_s21, %s1057_s21, %s1058_s22  }
  0x14   : > { %799 = dma.hbm_to_vmem [thread:$0]  (!%p1141_p6), %s237_s14, 1024, %s239_s20, [#allocation6], %s1057_s21, %s1057_s21, %s1058_s22  }
  0x15   : > { %802 = dma.hbm_to_vmem [thread:$0]  (!%p1141_p6), %s254_s18, 1024, %s256_s28, [#allocation9], %s1057_s21, %s1057_s21, %s1058_s22  }
  0x16   : > { %s1156_s10 = sadd.s32 1, %s1053_s27   ;;  %s32_s12 = sadd.s32 1, %s1049_s26 }
  0x17   : > { %s29_s30 = ssub.s32 %s1053_s27, %s1156_s10  ;;  %p39_p7 = scmp.ne.s32.totalorder %s1049_s26, %s1045_s25 }
  0x18   : > { %p30_p8 = scmp.eq.s32.totalorder %s29_s30, 0  ;;  %p40_p9 = scmp.eq.s32.totalorder %s1053_s27, 0 }
  0x19   : > { %p45_p10 = scmp.ne.s32.totalorder %s1045_s25, %s1041_s24  ;;  %p195_p11 = scmp.eq.s32.totalorder %s1124_s8, 1 }
  0x1a   : > { %s1168_s11 = scalar_select %p30_p8, %s1049_s26, %s32_s12  }
  0x1b   : > { %p1172_p12 = por %p46_p1, %p45_p10  ;;  %p1176_p13 = por %p195_p11, %p39_p7 }
  0x1c   : > { %p201_p0 = scmp.eq.s32.totalorder %s668_s29, 1  ;;  %p41_p2 = por %p40_p9, %p39_p7 }
  0x1d   : > { %s272_s15 = sand.u32 1, %s1049_s26   ;;  %p814_p6 = scmp.lt.s32.totalorder %s1053_s27, 2 }
  0x1e   : > { %p1181_p4 = por %p201_p0, %p45_p10  ;;  %s674_s17 = sshll.u32 %s272_s15, 3 }
  0x1f   : > { %s675_s18 = sshll.u32 %s1053_s27, 3  ;;  %s276_s23 = scalar_lea.vmem [#allocation2], %s674_s17 }
  0x20   : > { %s280_s21 = scalar_lea.hbm %s1269_s0, %s675_s18  ;;  %s284_s28 = sshll.u32 %s276_s23, 4  ;;  %s285_s28 = int_to_ptr.vmem [resolvable:$true] %s284_s28 }
  0x21   : > { %s282_s22 = sshll.u32 %s280_s21, 4  ;;  %p1190_p8 = pnand %p814_p6, %p41_p2  ;;  %s283_s22 = int_to_ptr.hbm [resolvable:$true] %s282_s22 }
  0x22   : > { %s273_s12 = scalar_lea.sflag [#allocation3], %s272_s15  ;;  %s949_s30 = sshra.s32 %s283_s22, 4  ;;  %s950_s30 = int_to_ptr.hbm [resolvable:$true] %s949_s30 }
  0x23   : > { %s951_s1 = scalar_lea.hbm %s950_s30, 8  ;;  %p953_p9 = pneg %p1190_p8 }
  0x24   : > { %p952_p7 = scmp.ne.s32.totalorder %s950_s30, %s951_s1  ;;  %s956_s17 = scalar_lea.hbm %s1269_s0, 16 }
  0x25   : > { %p957_p0 = scmp.lt.s32.totalorder %s950_s30, %s1269_s0  ;;  %p958_p2 = scmp.lt.s32.totalorder %s956_s17, %s951_s1 }
  0x26   : > { %p954_p10 = pnand %p953_p9, %p952_p7 }
  0x27   : > { %p959_p6 = por %p958_p2, %p957_p0 }
  0x28   : > { %p955_p11 = pneg %p954_p10 }
  0x2a   : > { %p960_p5 = pnand %p959_p6, %p955_p11 }
  0x2c   : > { %963 = shalt.err (!%p960_p5)
}
  0x2d   : > { %806 = dma.hbm_to_vmem [thread:$0]  (!%p1190_p8), %s283_s22, 128, %s285_s28, %s273_s12  }
  0x2e   : > { %293 = sbr.rel (%p1129_p3) target bundleno = 468 (0x1d4), region = 48  ;;  %s1207_s15 = sand.u32 (!%p1129_p3), 1, %s1045_s25  }
  0x2f   : > { %s677_s23 = sshll.u32 (!%p1129_p3), %s1207_s15, 3  ;;  %s296_s18 = scalar_lea.sflag (!%p1129_p3), [#allocation3], %s1207_s15 }
  0x30   : > { %s299_s1 = scalar_lea.vmem (!%p1129_p3), [#allocation2], %s677_s23 }
  0x33   : > { %1024 = dma.done.wait (%p1172_p12), %s296_s18, 128  }
  0x34   : > { %1026 = vsyncadd (%p1172_p12), %s296_s18, 4294967168 }
  0x35   : > { %1028 = dma.done.wait (%p46_p1), [#allocation6], 1280  }
  0x36   : > { %1030 = vsyncadd (%p46_p1), [#allocation6], 4294966016 }
  0x37   : > { %1032 = dma.done.wait (%p46_p1), [#allocation9], 1024  }
  0x38   : > { %1034 = vsyncadd (%p46_p1), [#allocation9], 4294966272  ;;  %v760_v0 = vld [vmem:[#allocation5 + $0x8] sm:$0xff]  ;;  %v759_v2 = vld [vmem:[#allocation5] sm:$0xff]  ;;  %vm369_vm0 = vcmask 261120   ;;  %s756_s29 = sshll.u32 %s1124_s8, 3 }
  0x39   : > { %v768_v1 = vld [vmem:[#allocation7 + $0x38] sm:$0xff]  ;;  %379 = vmatpush.bf16.msra.mxu0 %v760_v0  ;;  %v347_v3 = vld [vmem:[%s299_s1] sm:$0xff]  ;;  %v767_v4 = vld [vmem:[#allocation7 + $0x30] sm:$0xff]  ;;  %s564_s19 = scalar_lea.hbm %s1276_s7, %s756_s29  ;;  %s345_s21 = scalar_lea.vmem [#allocation10], %s677_s23 }
  0x3a   : > { %456 = vmatpush.bf16.msra.mxu1 %v768_v1  ;;  %v353_v5 = vpack.c.bf16 %v347_v3, %v347_v3  ;;  %v766_v6 = vld [vmem:[#allocation7 + $0x28] sm:$0xff]  ;;  %v765_v7 = vld [vmem:[#allocation7 + $0x20] sm:$0xff]  ;;  %v764_v8 = vld [vmem:[#allocation7 + $0x18] sm:$0xff]  ;;  %s566_s18 = sshll.u32 %s345_s21, 4  ;;  %s568_s1 = sshll.u32 %s564_s19, 4  ;;  %s567_s18 = int_to_ptr.vmem [resolvable:$true] %s566_s18  ;;  %s569_s1 = int_to_ptr.hbm [resolvable:$true] %s568_s1 }
  0x3b   : > { %v763_v9 = vld [vmem:[#allocation7 + $0x10] sm:$0xff]  ;;  %v762_v10 = vld [vmem:[#allocation7 + $0x8] sm:$0xff]  ;;  %v761_v11 = vld [vmem:[#allocation7] sm:$0xff]  ;;  %s554_s9 = scalar_lea.sflag [#allocation4], %s1207_s15  ;;  %s993_s8 = sshra.s32 %s569_s1, 4  ;;  %s994_s8 = int_to_ptr.hbm [resolvable:$true] %s993_s8 }
  0x3c   : > { %v776_v12 = vld [vmem:[#allocation8 + $0x38] sm:$0xff]  ;;  %v775_v13 = vld [vmem:[#allocation8 + $0x30] sm:$0xff]  ;;  %v774_v14 = vld [vmem:[#allocation8 + $0x28] sm:$0xff]  ;;  %s995_s13 = scalar_lea.hbm %s994_s8, 8  ;;  %s999_s29 = scalar_lea.hbm %s1276_s7, 16 }
  0x3d   : > { %380 = vmatpush.bf16.msra.mxu0 %v759_v2  ;;  %539 = vmatpush.bf16.msra.mxu2 %v776_v12  ;;  %v773_v15 = vld [vmem:[#allocation8 + $0x20] sm:$0xff]  ;;  %v772_v16 = vld [vmem:[#allocation8 + $0x18] sm:$0xff]  ;;  %v771_v17 = vld [vmem:[#allocation8 + $0x10] sm:$0xff]  ;;  %p996_p1 = scmp.ne.s32.totalorder %s994_s8, %s995_s13  ;;  %p1000_p12 = scmp.lt.s32.totalorder %s994_s8, %s1276_s7 }
  0x3e   : > { %457 = vmatpush.bf16.msra.mxu1 %v767_v4  ;;  %v856_v18 = vld [vmem:[%s1271_s2] ss:$0 sm:$0xff]  ;;  %v770_v24 = vld [vmem:[#allocation8 + $0x8] sm:$0xff]  ;;  %p1001_p8 = scmp.lt.s32.totalorder %s999_s29, %s995_s13 }
  0x3f   : > { %v769_v25 = vld [vmem:[#allocation8] sm:$0xff]  ;;  %p997_p3 = pnand %p996_p1, %p1176_p13 }
  0x40   : > { %690 = vmatmul.msk.bf16.vlgmr.msra.gmra.mxu0 %vm369_vm0, %v353_v5  ;;  %v857_v26 = vld [vmem:[%s1273_s4] ss:$0 sm:$0xff]  ;;  %p1002_p7 = por %p1001_p8, %p1000_p12 }
  0x41   : > { %540 = vmatpush.bf16.msra.mxu2 %v775_v13  ;;  %v858_v32 = vld [vmem:[%s1275_s6] ss:$0 sm:$0xff]  ;;  %p998_p5 = pneg %p997_p3 }
  0x42   : > { %458 = vmatpush.bf16.msra.mxu1 %v766_v6 }
  0x43   : > { %p1003_p9 = pnand %p1002_p7, %p998_p5 }
  0x45   : > { %541 = vmatpush.bf16.msra.mxu2 %v774_v14 }
  0x46   : > { %459 = vmatpush.bf16.msra.mxu1 %v765_v7 }
  0x49   : > { %542 = vmatpush.bf16.msra.mxu2 %v773_v15 }
  0x4a   : > { %460 = vmatpush.bf16.msra.mxu1 %v764_v8 }
  0x4d   : > { %543 = vmatpush.bf16.msra.mxu2 %v772_v16 }
  0x4e   : > { %461 = vmatpush.bf16.msra.mxu1 %v763_v9 }
  0x51   : > { %544 = vmatpush.bf16.msra.mxu2 %v771_v17 }
  0x52   : > { %462 = vmatpush.bf16.msra.mxu1 %v762_v10 }
  0x55   : > { %545 = vmatpush.bf16.msra.mxu2 %v770_v24 }
  0x56   : > { %463 = vmatpush.bf16.msra.mxu1 %v761_v11 }
  0x59   : > { %546 = vmatpush.bf16.msra.mxu2 %v769_v25 }
  0xbd   : > { %v382_v19 = vpop.f32.mrf.mxu0 }
  0xbe   : > { %v383_v20 = vadd.f32 %v856_v18, %v382_v19 }
  0xc0   : > { %v386_v21 = vmax.f32 %v383_v20, 0.0 }
  0xc2   : > { %v404_v22 = vpack.c.bf16 %v386_v21, %v386_v21 }
  0xc4   : > { %464 = vmatmul.bf16.vlgmr.msra.gmra.mxu1 %v404_v22 }
  0xc5   : > { %v384_v23 = vpop.f32.mrf.mxu0 }
 0x141   : > { %v465_v27 = vpop.f32.mrf.mxu1 }
 0x142   : > { %v466_v28 = vadd.f32 %v857_v26, %v465_v27 }
 0x144   : > { %v469_v29 = vmax.f32 %v466_v28, 0.0 }
 0x146   : > { %v487_v30 = vpack.c.bf16 %v469_v29, %v469_v29 }
 0x148   : > { %547 = vmatmul.bf16.vlgmr.msra.gmra.mxu2 %v487_v30 }
 0x149   : > { %v467_v31 = vpop.f32.mrf.mxu1 }
 0x1cb   : > { %v548_v33 = vpop.f32.mrf.mxu2 }
 0x1cc   : > { %v549_v34 = vadd.f32 %v858_v32, %v548_v33 }
 0x1ce   : > { %552 = vst [vmem:[%s345_s21] sm:$0xff] %v549_v34 }
 0x1cf   : > { %1006 = shalt.err (!%p1003_p9)
}
 0x1d0   : > { %791 = dma.vmem_to_hbm [thread:$0]  (%p1176_p13), %s567_s18, 128, %s569_s1, %s554_s9  }
 0x1d3   : > { %v550_v35 = vpop.f32.mrf.mxu2 }
 0x1d4 PF: > { %s580_s15 = sand.u32 1, %s1041_s24   ;;  %p1285_p10 = scmp.ge.s32.totalorder %s1053_s27, 2 }
 0x1d5   : > { %s581_s30 = scalar_lea.sflag [#allocation4], %s580_s15 }
 0x1d6   : > { %p808_p11 = pnand %p1285_p10, %p1181_p4 }
 0x1d8   : > { %p809_p0 = pneg %p808_p11 }
 0x1da   : > { %1036 = dma.done.wait (%p809_p0), %s581_s30, 128  }
 0x1db   : > { %1038 = vsyncadd (%p809_p0), %s581_s30, 4294967168  ;;  %p22_p2 = scmp.ge.s32.totalorder %s1156_s10, 4   ;;  %s1286_s24 = smov %s1045_s25 }
 0x1dc   : > { %s1287_s25 = smov %s1049_s26  ;;  %s1288_s26 = smov %s1168_s11 }
 0x1dd   : > { %s1289_s27 = smov %s1156_s10  ;;  %24 = sbr.rel (!%p22_p2) target bundleno = 9 (0x9), region = 105 }
 0x1e2   :  { %587 = vsyncpa [#allocation3], 1 }
 0x1e3   :  { %589 = vsyncpa [#allocation3 + $0x1], 1 }
 0x1e4   :  { %590 = vsyncpa [#allocation6], 1 }
 0x1e5   :  { %591 = vsyncpa [#allocation9], 1 }
 0x1e6   :  { %592 = vsyncpa [#allocation4], 1 }
 0x1e7   :  { %594 = vsyncpa [#allocation4 + $0x1], 1 }

</bundles_post_ra>
